<compile_context>
chip_gen: v7x
topology: tpu7x:2x2x1
jax: 0.10.0
libtpu: 0.0.40
codegen_flags: <defaults>
</compile_context>

<pallas_src>
import jax
import jax.numpy as jnp
from jax import lax
from jax.experimental import pallas as pl
from jax.experimental.pallas import tpu as pltpu

NUM_HEADS = 1
QKV_DIM = 32                                   # feature dim D (qkv_dim in the torch module)
DROPOUT_P = 0.0                                # `dropout_p` undefined in source; use 0.0
SCALE_FACTOR = (QKV_DIM / NUM_HEADS) ** 0.5    # NOTE: the module *multiplies* by this


def _attn_kernel(x1_ref, x2_ref, wq_ref, bq_ref, wk_ref, bk_ref, wv_ref, bv_ref,
                 o_ref):
    """One grid step processes a block of `bb` batch elements.

    x1_ref: (bb, S1, D)    x2_ref: (bb, S2, D)
    wq_ref: (D, D)  (scale_factor already folded in)   bq_ref: (1, D) (scaled)
    wk_ref, wv_ref: (D, D)                             bk_ref, bv_ref: (1, D)
    o_ref:  (bb, S1, D)
    """
    bb, s1, d = x1_ref.shape
    _, s2, _ = x2_ref.shape

    # Flatten batch into the sublane (row) dim for the projections — one wide
    # matmul each instead of per-batch 8-row matmuls.
    x1 = x1_ref[...].reshape(bb * s1, d)                 # (bb*S1, D)
    x2 = x2_ref[...].reshape(bb * s2, d)                 # (bb*S2, D)

    q = jnp.dot(x1, wq_ref[...], preferred_element_type=jnp.float32) + bq_ref[...]
    k = jnp.dot(x2, wk_ref[...], preferred_element_type=jnp.float32) + bk_ref[...]
    v = jnp.dot(x2, wv_ref[...], preferred_element_type=jnp.float32) + bv_ref[...]

    q = q.reshape(bb, s1, d)
    k = k.reshape(bb, s2, d)
    v = v.reshape(bb, s2, d)

    # s[b] = q[b] @ k[b]^T without materializing a transposed K tile.
    s = lax.dot_general(q, k, (((2,), (2,)), ((0,), (0,))),
                        preferred_element_type=jnp.float32)      # (bb, S1, S2)

    # Numerically stable softmax over the last dim; exact reciprocal.
    s = s - jnp.max(s, axis=-1, keepdims=True)
    p = jnp.exp(s)
    p = p * pl.reciprocal(jnp.sum(p, axis=-1, keepdims=True), approx=False)

    # TODO(synk): dropout_p is undefined in the source module; p=0.0 (eval)
    # dropout is the identity, so no RNG path is implemented.

    o = lax.dot_general(p, v, (((2,), (1,)), ((0,), (0,))),
                        preferred_element_type=jnp.float32)      # (bb, S1, D)
    o_ref[...] = o.astype(o_ref.dtype)


def _tensorcores_per_chip():
    """Best-effort TensorCore count; any failure falls back to 1 (safe)."""
    try:
        dev = jax.devices()[0]
        n = getattr(dev, "num_cores", None)
        if n:
            return int(n)
        kind = str(getattr(dev, "device_kind", "")).lower()
        return 2 if "v7" in kind else 1
    except Exception:  # pragma: no cover
        return 1


def _num_grid_blocks(batch, seq):
    """Grid strategy.

    Default: one kernel invocation with the whole batch (a grid on a single-TC
    chip is just a serial loop with ~0.35-0.6 us per-step overhead).
    Only split into 2 core-parallel blocks when the chip has 2 TensorCores,
    the batch splits evenly, and each block carries >=128 projection rows so
    the per-step overhead is amortized.
    """
    if (batch % 2 == 0
            and (batch // 2) * seq >= 128
            and _tensorcores_per_chip() >= 2):
        return 2
    return 1


def prepare_params(wq, bq, wk, bk, wv, bv):
    """One-time parameter prep (call OFF the hot path).

    Folds the multiplicative scale_factor into the Q projection so the kernel
    (and the per-call wrapper) do zero extra work.
    """
    return (wq * SCALE_FACTOR, bq * SCALE_FACTOR, wk, bk, wv, bv)


@jax.jit
def attention_forward(x1, x2, wq_s, bq_s, wk, bk, wv, bv):
    B, S1, D = x1.shape
    _, S2, _ = x2.shape

    nblk = _num_grid_blocks(B, S1)
    bb = B // nblk

    return pl.pallas_call(
        _attn_kernel,
        out_shape=jax.ShapeDtypeStruct((B, S1, D), x1.dtype),
        grid_spec=pl.GridSpec(
            grid=(nblk,),
            in_specs=[
                pl.BlockSpec((bb, S1, D), lambda b: (b, 0, 0)),   # x1
                pl.BlockSpec((bb, S2, D), lambda b: (b, 0, 0)),   # x2
                pl.BlockSpec((D, D), lambda b: (0, 0)),           # Wq^T * scale
                pl.BlockSpec((1, D), lambda b: (0, 0)),           # bq * scale
                pl.BlockSpec((D, D), lambda b: (0, 0)),           # Wk^T
                pl.BlockSpec((1, D), lambda b: (0, 0)),           # bk
                pl.BlockSpec((D, D), lambda b: (0, 0)),           # Wv^T
                pl.BlockSpec((1, D), lambda b: (0, 0)),           # bv
            ],
            out_specs=pl.BlockSpec((bb, S1, D), lambda b: (b, 0, 0)),
        ),
        compiler_params=pltpu.CompilerParams(
            dimension_semantics=("parallel",)),
    )(x1, x2, wq_s, bq_s, wk, bk, wv, bv)


def _init_linear(key, in_dim, out_dim):
    """Deterministic torch.nn.Linear-style init: U(-1/sqrt(in), 1/sqrt(in))."""
    kw, kb = jax.random.split(key)
    bound = 1.0 / (in_dim ** 0.5)
    w = jax.random.uniform(kw, (out_dim, in_dim), jnp.float32, -bound, bound)
    b = jax.random.uniform(kb, (out_dim,), jnp.float32, -bound, bound)
    # pre-transpose so the kernel computes x @ w_t + b == torch Linear
    return w.T, b.reshape(1, out_dim)


def reference(x1, x2, wq, bq, wk, bk, wv, bv):
    hi = lax.Precision.HIGHEST
    q = jnp.einsum("bsd,de->bse", x1, wq, precision=hi) + bq
    k = jnp.einsum("bsd,de->bse", x2, wk, precision=hi) + bk
    v = jnp.einsum("bsd,de->bse", x2, wv, precision=hi) + bv
    s = jnp.einsum("bqd,bkd->bqk", q, k, precision=hi) * SCALE_FACTOR
    p = jax.nn.softmax(s, axis=-1)
    return jnp.einsum("bqk,bkd->bqd", p, v, precision=hi)


if __name__ == "__main__":
    B, S1, S2, D = 2, 8, 8, QKV_DIM

    root = jax.random.PRNGKey(0)
    kx1, kx2, kq, kk, kv = jax.random.split(root, 5)

    x1 = jax.random.normal(kx1, (B, S1, D), jnp.float32)
    x2 = jax.random.normal(kx2, (B, S2, D), jnp.float32)

    wq, bq = _init_linear(kq, D, D)
    wk, bk = _init_linear(kk, D, D)
    wv, bv = _init_linear(kv, D, D)

    # One-time weight prep (scale folding) — NOT in the per-call path.
    params = prepare_params(wq, bq, wk, bk, wv, bv)

    out = attention_forward(x1, x2, *params)
    out = jax.block_until_ready(out)

    ref = reference(x1, x2, wq, bq, wk, bk, wv, bv)
    assert out.shape == (B, S1, D)
    # Exact softmax reciprocal + multi-pass f32 MXU matmuls -> tight tolerance.
    assert jnp.allclose(out, ref, atol=5e-4, rtol=5e-4), "mismatch vs reference"

    print("KERNEL_OK")
</pallas_src>

<mosaic_0001>
module attributes {stable_mosaic.version = 11 : i64} {
  func.func @_attn_kernel(%arg0: i32, %arg1: memref<2x8x32xf32, #tpu.memory_space<vmem>>, %arg2: memref<2x8x32xf32, #tpu.memory_space<vmem>>, %arg3: memref<32x32xf32, #tpu.memory_space<vmem>>, %arg4: memref<1x32xf32, #tpu.memory_space<vmem>>, %arg5: memref<32x32xf32, #tpu.memory_space<vmem>>, %arg6: memref<1x32xf32, #tpu.memory_space<vmem>>, %arg7: memref<32x32xf32, #tpu.memory_space<vmem>>, %arg8: memref<1x32xf32, #tpu.memory_space<vmem>>, %arg9: memref<2x8x32xf32, #tpu.memory_space<vmem>>) attributes {dimension_semantics = [#tpu.dimension_semantics<parallel>], iteration_bounds = array<i64: 1>, scalar_prefetch = 0 : i64, scratch_operands = 0 : i64, tpu.core_type = #tpu.core_type<tc>, window_params = [{transform_indices = @transform_0, window_bounds = array<i64: 2, 8, 32>}, {transform_indices = @transform_1, window_bounds = array<i64: 2, 8, 32>}, {pipeline_mode = #tpu.pipeline_mode<synchronous>, transform_indices = @transform_2, window_bounds = array<i64: 32, 32>}, {pipeline_mode = #tpu.pipeline_mode<synchronous>, transform_indices = @transform_3, window_bounds = array<i64: 1, 32>}, {pipeline_mode = #tpu.pipeline_mode<synchronous>, transform_indices = @transform_4, window_bounds = array<i64: 32, 32>}, {pipeline_mode = #tpu.pipeline_mode<synchronous>, transform_indices = @transform_5, window_bounds = array<i64: 1, 32>}, {pipeline_mode = #tpu.pipeline_mode<synchronous>, transform_indices = @transform_6, window_bounds = array<i64: 32, 32>}, {pipeline_mode = #tpu.pipeline_mode<synchronous>, transform_indices = @transform_7, window_bounds = array<i64: 1, 32>}, {transform_indices = @transform_8, window_bounds = array<i64: 2, 8, 32>}]} {
    %c0 = arith.constant 0 : index
    %c0_0 = arith.constant 0 : index
    %c0_1 = arith.constant 0 : index
    %0 = vector.load %arg1[%c0, %c0_0, %c0_1] : memref<2x8x32xf32, #tpu.memory_space<vmem>>, vector<2x8x32xf32>
    %1 = vector.shape_cast %0 : vector<2x8x32xf32> to vector<16x32xf32>
    %c0_2 = arith.constant 0 : index
    %c0_3 = arith.constant 0 : index
    %c0_4 = arith.constant 0 : index
    %2 = vector.load %arg2[%c0_2, %c0_3, %c0_4] : memref<2x8x32xf32, #tpu.memory_space<vmem>>, vector<2x8x32xf32>
    %3 = vector.shape_cast %2 : vector<2x8x32xf32> to vector<16x32xf32>
    %c0_5 = arith.constant 0 : index
    %c0_6 = arith.constant 0 : index
    %4 = vector.load %arg3[%c0_5, %c0_6] : memref<32x32xf32, #tpu.memory_space<vmem>>, vector<32x32xf32>
    %cst = arith.constant dense<0.000000e+00> : vector<16x32xf32>
    %5 = tpu.matmul %1, %4, %cst {dimension_numbers = #tpu.dot_dimension_numbers<[1], [0], [0], [1], [0, 0, 1, 1], [], []>} : vector<16x32xf32>, vector<32x32xf32>, vector<16x32xf32> -> vector<16x32xf32>
    %c0_7 = arith.constant 0 : index
    %c0_8 = arith.constant 0 : index
    %6 = vector.load %arg4[%c0_7, %c0_8] : memref<1x32xf32, #tpu.memory_space<vmem>>, vector<1x32xf32>
    %7 = vector.broadcast %6 : vector<1x32xf32> to vector<16x32xf32>
    %8 = arith.addf %5, %7 : vector<16x32xf32>
    %c0_9 = arith.constant 0 : index
    %c0_10 = arith.constant 0 : index
    %9 = vector.load %arg5[%c0_9, %c0_10] : memref<32x32xf32, #tpu.memory_space<vmem>>, vector<32x32xf32>
    %cst_11 = arith.constant dense<0.000000e+00> : vector<16x32xf32>
    %10 = tpu.matmul %3, %9, %cst_11 {dimension_numbers = #tpu.dot_dimension_numbers<[1], [0], [0], [1], [0, 0, 1, 1], [], []>} : vector<16x32xf32>, vector<32x32xf32>, vector<16x32xf32> -> vector<16x32xf32>
    %c0_12 = arith.constant 0 : index
    %c0_13 = arith.constant 0 : index
    %11 = vector.load %arg6[%c0_12, %c0_13] : memref<1x32xf32, #tpu.memory_space<vmem>>, vector<1x32xf32>
    %12 = vector.broadcast %11 : vector<1x32xf32> to vector<16x32xf32>
    %13 = arith.addf %10, %12 : vector<16x32xf32>
    %c0_14 = arith.constant 0 : index
    %c0_15 = arith.constant 0 : index
    %14 = vector.load %arg7[%c0_14, %c0_15] : memref<32x32xf32, #tpu.memory_space<vmem>>, vector<32x32xf32>
    %cst_16 = arith.constant dense<0.000000e+00> : vector<16x32xf32>
    %15 = tpu.matmul %3, %14, %cst_16 {dimension_numbers = #tpu.dot_dimension_numbers<[1], [0], [0], [1], [0, 0, 1, 1], [], []>} : vector<16x32xf32>, vector<32x32xf32>, vector<16x32xf32> -> vector<16x32xf32>
    %c0_17 = arith.constant 0 : index
    %c0_18 = arith.constant 0 : index
    %16 = vector.load %arg8[%c0_17, %c0_18] : memref<1x32xf32, #tpu.memory_space<vmem>>, vector<1x32xf32>
    %17 = vector.broadcast %16 : vector<1x32xf32> to vector<16x32xf32>
    %18 = arith.addf %15, %17 : vector<16x32xf32>
    %19 = vector.shape_cast %8 : vector<16x32xf32> to vector<2x8x32xf32>
    %20 = vector.shape_cast %13 : vector<16x32xf32> to vector<2x8x32xf32>
    %21 = vector.shape_cast %18 : vector<16x32xf32> to vector<2x8x32xf32>
    %cst_19 = arith.constant dense<0.000000e+00> : vector<2x8x8xf32>
    %22 = tpu.matmul %19, %20, %cst_19 {dimension_numbers = #tpu.dot_dimension_numbers<[2], [2], [1], [1], [0, 0, 0, 1, 1, 1], [0], [0]>} : vector<2x8x32xf32>, vector<2x8x32xf32>, vector<2x8x8xf32> -> vector<2x8x8xf32>
    %cst_20 = arith.constant dense<0xFF800000> : vector<2x8xf32>
    %23 = vector.multi_reduction <maximumf>, %22, %cst_20 [2] : vector<2x8x8xf32> to vector<2x8xf32>
    %24 = vector.shape_cast %23 : vector<2x8xf32> to vector<2x8x1xf32>
    %25 = vector.broadcast %24 : vector<2x8x1xf32> to vector<2x8x8xf32>
    %26 = arith.subf %22, %25 : vector<2x8x8xf32>
    %27 = math.exp %26 : vector<2x8x8xf32>
    %cst_21 = arith.constant dense<0.000000e+00> : vector<2x8xf32>
    %28 = vector.multi_reduction <add>, %27, %cst_21 [2] : vector<2x8x8xf32> to vector<2x8xf32>
    %29 = vector.shape_cast %28 : vector<2x8xf32> to vector<2x8x1xf32>
    %30 = tpu.reciprocal %29 : vector<2x8x1xf32> -> vector<2x8x1xf32>
    %31 = vector.broadcast %30 : vector<2x8x1xf32> to vector<2x8x8xf32>
    %32 = arith.mulf %27, %31 : vector<2x8x8xf32>
    %cst_22 = arith.constant dense<0.000000e+00> : vector<2x8x32xf32>
    %33 = tpu.matmul %32, %21, %cst_22 {dimension_numbers = #tpu.dot_dimension_numbers<[2], [1], [1], [2], [0, 0, 0, 1, 1, 2], [0], [0]>} : vector<2x8x8xf32>, vector<2x8x32xf32>, vector<2x8x32xf32> -> vector<2x8x32xf32>
    %c0_23 = arith.constant 0 : index
    %c0_24 = arith.constant 0 : index
    %c0_25 = arith.constant 0 : index
    %34 = vector.load %arg9[%c0_23, %c0_24, %c0_25] : memref<2x8x32xf32, #tpu.memory_space<vmem>>, vector<2x8x32xf32>
    tpu.vector_store %arg9[%c0_23, %c0_24, %c0_25], %33 {strides = array<i32>} : memref<2x8x32xf32, #tpu.memory_space<vmem>>, vector<2x8x32xf32>,
    return
  }
  func.func @transform_0(%arg0: i32) -> (i32, i32, i32) {
    %c0_i32 = arith.constant 0 : i32
    %c0_i32_0 = arith.constant 0 : i32
    %c0_i32_1 = arith.constant 0 : i32
    return %arg0, %c0_i32, %c0_i32_0 : i32, i32, i32
  }
  func.func @transform_1(%arg0: i32) -> (i32, i32, i32) {
    %c0_i32 = arith.constant 0 : i32
    %c0_i32_0 = arith.constant 0 : i32
    %c0_i32_1 = arith.constant 0 : i32
    return %arg0, %c0_i32, %c0_i32_0 : i32, i32, i32
  }
  func.func @transform_2(%arg0: i32) -> (i32, i32) {
    %c0_i32 = arith.constant 0 : i32
    %c0_i32_0 = arith.constant 0 : i32
    %c0_i32_1 = arith.constant 0 : i32
    return %c0_i32, %c0_i32_0 : i32, i32
  }
  func.func @transform_3(%arg0: i32) -> (i32, i32) {
    %c0_i32 = arith.constant 0 : i32
    %c0_i32_0 = arith.constant 0 : i32
    %c0_i32_1 = arith.constant 0 : i32
    return %c0_i32, %c0_i32_0 : i32, i32
  }
  func.func @transform_4(%arg0: i32) -> (i32, i32) {
    %c0_i32 = arith.constant 0 : i32
    %c0_i32_0 = arith.constant 0 : i32
    %c0_i32_1 = arith.constant 0 : i32
    return %c0_i32, %c0_i32_0 : i32, i32
  }
  func.func @transform_5(%arg0: i32) -> (i32, i32) {
    %c0_i32 = arith.constant 0 : i32
    %c0_i32_0 = arith.constant 0 : i32
    %c0_i32_1 = arith.constant 0 : i32
    return %c0_i32, %c0_i32_0 : i32, i32
  }
  func.func @transform_6(%arg0: i32) -> (i32, i32) {
    %c0_i32 = arith.constant 0 : i32
    %c0_i32_0 = arith.constant 0 : i32
    %c0_i32_1 = arith.constant 0 : i32
    return %c0_i32, %c0_i32_0 : i32, i32
  }
  func.func @transform_7(%arg0: i32) -> (i32, i32) {
    %c0_i32 = arith.constant 0 : i32
    %c0_i32_0 = arith.constant 0 : i32
    %c0_i32_1 = arith.constant 0 : i32
    return %c0_i32, %c0_i32_0 : i32, i32
  }
  func.func @transform_8(%arg0: i32) -> (i32, i32, i32) {
    %c0_i32 = arith.constant 0 : i32
    %c0_i32_0 = arith.constant 0 : i32
    %c0_i32_1 = arith.constant 0 : i32
    return %arg0, %c0_i32, %c0_i32_0 : i32, i32, i32
  }
}

</mosaic_0001>

<bundles_post_ra>
// kernel: attention_forward.1
= control target key start
LH: loop header
LB: loop body
LE: loop exit
PB: predicated region body
PF: predicated region fallthrough
CT: control target
= control target key end

     0   :  { %13 = vsyncpa [#allocation3], 0  ;;  %s1181_s0 = inlined_call_operand.hbm [shape: f32[2,8,32], index: 0, kind: input, shape index: {}]   ;;  %s1182_s1 = inlined_call_operand.hbm [shape: f32[2,8,32], index: 1, kind: input, shape index: {}]   ;;  %s1183_s2 = inlined_call_operand.hbm [shape: f32[32,32], index: 2, kind: input, shape index: {}]   ;;  %s1184_s3 = inlined_call_operand.vmem [shape: f32[1,32], index: 3, kind: input, shape index: {}]   ;;  %s1185_s4 = inlined_call_operand.hbm [shape: f32[32,32], index: 4, kind: input, shape index: {}]   ;;  %s1186_s5 = inlined_call_operand.vmem [shape: f32[1,32], index: 5, kind: input, shape index: {}]   ;;  %s1187_s6 = inlined_call_operand.hbm [shape: f32[32,32], index: 6, kind: input, shape index: {}]   ;;  %s1188_s7 = inlined_call_operand.vmem [shape: f32[1,32], index: 7, kind: input, shape index: {}]   ;;  %s1189_s8 = inlined_call_operand.hbm [shape: f32[2,8,32], index: 8, kind: output, shape index: {}]  }
   0x1   :  { %14 = vsyncpa [#allocation6], 0 }
   0x2   :  { %15 = vsyncpa [#allocation9], 0 }
   0x3   :  { %16 = vsyncpa [#allocation4], 0  ;;  %s991_s27 = smov [#allocation5]   ;;  %s992_s29 = smov [#allocation8]  }
   0x4   :  { %s34_s28 = sshll.u32 %s991_s27, 4  ;;  %s60_s30 = sshll.u32 %s992_s29, 4  ;;  %s35_s28 = int_to_ptr.vmem [resolvable:$true] %s34_s28  ;;  %s1046_s30 = int_to_ptr.vmem [resolvable:$true] %s60_s30 }
   0x5   :  { %s851_s11 = scalar_lea.hbm %s1182_s1, 256 }
   0x6   :  { %p852_p0 = scmp.ne.s32.totalorder %s1182_s1, %s851_s11  ;;  %p855_p1 = scmp.lt.u32.totalorder %s851_s11, %s1182_s1 }
   0x8   :  { %p857_p2 = pnand %p855_p1, %p852_p0 }
   0xa   :  { %860 = shalt.err (!%p857_p2)
}
   0xb   :  { %s861_s16 = scalar_lea.vmem %s35_s28, 256  ;;  %p866_p4 = scmp.lt.s32.totalorder %s35_s28, %s35_s28 }
   0xc   :  { %p862_p3 = scmp.ne.s32.totalorder %s35_s28, %s861_s16  ;;  %p867_p5 = scmp.lt.s32.totalorder %s861_s16, %s861_s16 }
   0xe   :  { %p868_p6 = por %p867_p5, %p866_p4 }
  0x10   :  { %p869_p7 = pnand %p868_p6, %p862_p3 }
  0x12   :  { %872 = shalt.err (!%p869_p7)
}
  0x13   :  { %s993_s17 = smov 128   ;;  %s994_s18 = smov 8  }
  0x14   :  { %40 = dma.hbm_to_vmem [thread:$0]  %s1182_s1, 256, %s35_s28, [#allocation6], %s993_s17, %s993_s17, %s994_s18  }
  0x15   :  { %s873_s23 = scalar_lea.hbm %s1185_s4, 512 }
  0x16   :  { %p874_p8 = scmp.ne.s32.totalorder %s1185_s4, %s873_s23  ;;  %p877_p9 = scmp.lt.u32.totalorder %s873_s23, %s1185_s4 }
  0x18   :  { %p879_p10 = pnand %p877_p9, %p874_p8 }
  0x1a   :  { %882 = shalt.err (!%p879_p10)
}
  0x1b   :  { %s883_s29 = scalar_lea.vmem %s1046_s30, 512  ;;  %p888_p12 = scmp.lt.s32.totalorder %s1046_s30, %s1046_s30 }
  0x1c   :  { %p884_p11 = scmp.ne.s32.totalorder %s1046_s30, %s883_s29  ;;  %p889_p13 = scmp.lt.s32.totalorder %s883_s29, %s883_s29 }
  0x1e   :  { %p890_p0 = por %p889_p13, %p888_p12 }
  0x20   :  { %p891_p1 = pnand %p890_p0, %p884_p11 }
  0x22   :  { %894 = shalt.err (!%p891_p1)
}
  0x23   :  { %66 = dma.hbm_to_vmem [thread:$0]  %s1185_s4, 512, %s1046_s30, [#allocation9], %s993_s17, %s993_s17, %s994_s18  }
  0x24   :  { %s995_s9 = smov [#allocation2]   ;;  %s996_s11 = smov [#allocation7]  }
  0x25   :  { %s22_s10 = sshll.u32 %s995_s9, 4  ;;  %s46_s12 = sshll.u32 %s996_s11, 4  ;;  %s23_s10 = int_to_ptr.vmem [resolvable:$true] %s22_s10  ;;  %s1083_s12 = int_to_ptr.vmem [resolvable:$true] %s46_s12 }
  0x26   :  { %s895_s15 = scalar_lea.hbm %s1181_s0, 256 }
  0x27   :  { %p896_p2 = scmp.ne.s32.totalorder %s1181_s0, %s895_s15  ;;  %p899_p3 = scmp.lt.u32.totalorder %s895_s15, %s1181_s0 }
  0x29   :  { %p901_p4 = pnand %p899_p3, %p896_p2 }
  0x2b   :  { %904 = shalt.err (!%p901_p4)
}
  0x2c   :  { %s905_s4 = scalar_lea.vmem %s23_s10, 256  ;;  %p910_p6 = scmp.lt.s32.totalorder %s23_s10, %s23_s10 }
  0x2d   :  { %p906_p5 = scmp.ne.s32.totalorder %s23_s10, %s905_s4  ;;  %p911_p7 = scmp.lt.s32.totalorder %s905_s4, %s905_s4 }
  0x2f   :  { %p912_p8 = por %p911_p7, %p910_p6 }
  0x31   :  { %p913_p9 = pnand %p912_p8, %p906_p5 }
  0x33   :  { %916 = shalt.err (!%p913_p9)
}
  0x34   :  { %28 = dma.hbm_to_vmem [thread:$0]  %s1181_s0, 256, %s23_s10, [#allocation3], %s993_s17, %s993_s17, %s994_s18  }
  0x35   :  { %s917_s25 = scalar_lea.hbm %s1183_s2, 512 }
  0x36   :  { %p918_p10 = scmp.ne.s32.totalorder %s1183_s2, %s917_s25  ;;  %p921_p11 = scmp.lt.u32.totalorder %s917_s25, %s1183_s2 }
  0x38   :  { %p923_p12 = pnand %p921_p11, %p918_p10 }
  0x3a   :  { %926 = shalt.err (!%p923_p12)
}
  0x3b   :  { %s927_s28 = scalar_lea.vmem %s1083_s12, 512  ;;  %p932_p0 = scmp.lt.s32.totalorder %s1083_s12, %s1083_s12 }
  0x3c   :  { %p928_p13 = scmp.ne.s32.totalorder %s1083_s12, %s927_s28  ;;  %p933_p1 = scmp.lt.s32.totalorder %s927_s28, %s927_s28 }
  0x3e   :  { %p934_p2 = por %p933_p1, %p932_p0 }
  0x40   :  { %p935_p3 = pnand %p934_p2, %p928_p13 }
  0x42   :  { %938 = shalt.err (!%p935_p3)
}
  0x43   :  { %52 = dma.hbm_to_vmem [thread:$0]  %s1183_s2, 512, %s1083_s12, [#allocation6], %s993_s17, %s993_s17, %s994_s18  }
  0x44   :  { %s997_s10 = smov [#allocation10]   ;;  %s939_s15 = scalar_lea.hbm %s1187_s6, 512 }
  0x45   :  { %s74_s11 = sshll.u32 %s997_s10, 4  ;;  %p940_p4 = scmp.ne.s32.totalorder %s1187_s6, %s939_s15  ;;  %s75_s11 = int_to_ptr.vmem [resolvable:$true] %s74_s11 }
  0x46   :  { %p943_p5 = scmp.lt.u32.totalorder %s939_s15, %s1187_s6 }
  0x48   :  { %p945_p6 = pnand %p943_p5, %p940_p4 }
  0x4a   :  { %948 = shalt.err (!%p945_p6)
}
  0x4b   :  { %s949_s4 = scalar_lea.vmem %s75_s11, 512  ;;  %p954_p8 = scmp.lt.s32.totalorder %s75_s11, %s75_s11 }
  0x4c   :  { %p950_p7 = scmp.ne.s32.totalorder %s75_s11, %s949_s4  ;;  %p955_p9 = scmp.lt.s32.totalorder %s949_s4, %s949_s4 }
  0x4e   :  { %p956_p10 = por %p955_p9, %p954_p8 }
  0x50   :  { %p957_p11 = pnand %p956_p10, %p950_p7 }
  0x52   :  { %960 = shalt.err (!%p957_p11)
}
  0x53   :  { %80 = dma.hbm_to_vmem [thread:$0]  %s1187_s6, 512, %s75_s11, [#allocation9], %s993_s17, %s993_s17, %s994_s18  }
  0x54   :  { %983 = dma.done.wait [#allocation3], 256  }
  0x55   :  { %984 = vsyncadd [#allocation3], 4294967040 }
  0x56   :  { %985 = dma.done.wait [#allocation6], 768  }
  0x57   :  { %986 = vsyncadd [#allocation6], 4294966528 }
  0x58   :  { %987 = dma.done.wait [#allocation9], 1024  }
  0x59   :  { %988 = vsyncadd [#allocation9], 4294966272  ;;  %v195_v0 = vld [vmem:[#allocation8] sm:$0xff]  ;;  %v196_v1 = vld [vmem:[#allocation8 + $0x8] sm:$0xff]  ;;  %vm113_vm0 = vcmask 261120   ;;  %v998_v16 = vmov 0.0  }
  0x5a   :  { %v102_v2 = vld [vmem:[#allocation7] sm:$0xff]  ;;  %v817_v3 = vpack.c.bf16 %v196_v1, %v195_v0  ;;  %v103_v4 = vld [vmem:[#allocation7 + $0x8] sm:$0xff]  ;;  %v197_v5 = vld [vmem:[#allocation8 + $0x10] sm:$0xff]  ;;  %vm999_vm1 = vmmov 0   ;;  %vm525_vm2 = vcmask 64512   ;;  %s1000_s24 = smov [#allocation11]  }
  0x5b   :  { %v198_v6 = vld [vmem:[#allocation8 + $0x18] sm:$0xff]  ;;  %v809_v7 = vpack.c.bf16 %v103_v4, %v102_v2  ;;  %v104_v9 = vld [vmem:[#allocation7 + $0x10] sm:$0xff]  ;;  %v98_v13 = vld [vmem:[#allocation2] sm:$0xff] }
  0x5c   :  { %v821_v8 = vpack.c.bf16 %v198_v6, %v197_v5  ;;  %v105_v10 = vld [vmem:[#allocation7 + $0x18] sm:$0xff]  ;;  %v100_v11 = vld [vmem:[#allocation5] sm:$0xff]  ;;  %818 = vmatprep.subr.bf16.mxu1 %v817_v3  ;;  %764 = vmatprep.mubr.msk.f32.mxu0 %vm113_vm0, %v98_v13  ;;  %v99_v15 = vld [vmem:[#allocation2 + $0x8] sm:$0xff] }
  0x5d   :  { %v813_v12 = vpack.c.bf16 %v105_v10, %v104_v9  ;;  %775 = vmatprep.mubr.msk.f32.mxu1 %vm113_vm0, %v100_v11  ;;  %820 = vmatpush3.bf16.msra.mxu1 %v817_v3  ;;  %v101_v14 = vld [vmem:[#allocation5 + $0x8] sm:$0xff]  ;;  %v718_v17 = vld [vmem:[%s1186_s5] ss:$0 sm:$0xff]  ;;  %v288_v28 = vld [vmem:[#allocation10 + $0x8] sm:$0xff] }
  0x5e   :  { %810 = vmatprep.subr.bf16.mxu0 %v809_v7  ;;  %822 = vmatprep.subr.bf16.mxu1 %v821_v8  ;;  %v715_v19 = vld [vmem:[%s1184_s3] ss:$0 sm:$0xff]  ;;  %v289_v29 = vld [vmem:[#allocation10 + $0x10] sm:$0xff]  ;;  %v290_v31 = vld [vmem:[#allocation10 + $0x18] sm:$0xff] }
  0x5f   :  { %812 = vmatpush3.bf16.msra.mxu0 %v809_v7  ;;  %v287_v27 = vld [vmem:[#allocation10] sm:$0xff]  ;;  %v829_v32 = vpack.c.bf16 %v290_v31, %v289_v29 }
  0x60   :  { %814 = vmatprep.subr.bf16.mxu0 %v813_v12  ;;  %v825_v30 = vpack.c.bf16 %v288_v28, %v287_v27  ;;  %v721_v50 = vld [vmem:[%s1188_s7] ss:$0 sm:$0xff]  ;;  %s701_s7 = sshll.u32 %s1000_s24, 4  ;;  %s702_s7 = int_to_ptr.vmem [resolvable:$true] %s701_s7 }
  0x61   :  { %824 = vmatpush3.bf16.msra.mxu1 %v821_v8  ;;  %s961_s25 = scalar_lea.vmem %s702_s7, 256  ;;  %p966_p13 = scmp.lt.s32.totalorder %s702_s7, %s702_s7 }
  0x62   :  { %789 = vmatprep.subr.mxu1 %v998_v16  ;;  %p962_p12 = scmp.ne.s32.totalorder %s702_s7, %s961_s25  ;;  %p967_p0 = scmp.lt.s32.totalorder %s961_s25, %s961_s25 }
  0x63   :  { %816 = vmatpush3.bf16.msra.mxu0 %v813_v12 }
  0x64   :  { %776 = vmatmul.mubr.msk.f32.vlgmr.msra.gmra.mrb[0].mxu1 %vm113_vm0, %v101_v14  ;;  %826 = vmatprep.subr.bf16.mxu0 %v825_v30  ;;  %p968_p1 = por %p967_p0, %p966_p13 }
  0x65   :  { %791 = vmatprep.mubr.msk.f32.mxu1 %vm999_vm1, %v998_v16 }
  0x66   :  { %765 = vmatmul.mubr.msk.f32.vlgmr.msra.gmra.mrb[0].mxu0 %vm113_vm0, %v99_v15  ;;  %p969_p2 = pnand %p968_p1, %p962_p12 }
  0x67   :  { %786 = vmatprep.mubr.msk.f32.mxu0 %vm113_vm0, %v100_v11  ;;  %828 = vmatpush3.bf16.msra.mxu0 %v825_v30 }
  0x68   :  { %830 = vmatprep.subr.bf16.mxu0 %v829_v32 }
  0x6b   :  { %832 = vmatpush3.bf16.msra.mxu0 %v829_v32 }
  0x6c   :  { %799 = vmatprep.subr.mxu0 %v998_v16 }
  0x6e   :  { %787 = vmatmul.mubr.msk.f32.vlgmr.msra.gmra.mrb[2].mxu0 %vm113_vm0, %v101_v14 }
  0x6f   :  { %801 = vmatprep.mubr.msk.f32.mxu0 %vm999_vm1, %v998_v16 }
 0x137   :  { %v777_v18 = vpop.f32.mrb[0].mxu1 }
 0x138   :  { %v278_v20 = vpop.f32.mrb[1].mxu1  ;;  %v284_v25 = vadd.f32 %v777_v18, %v718_v17 }
 0x139   :  { %v766_v21 = vpop.f32.mrb[0].mxu0  ;;  %v279_v22 = vadd.f32 %v718_v17, %v278_v20 }
 0x13a   :  { %v186_v23 = vpop.f32.mrb[1].mxu0  ;;  %v192_v26 = vadd.f32 %v766_v21, %v715_v19 }
 0x13b   :  { %v187_v24 = vadd.f32 %v715_v19, %v186_v23  ;;  %790 = vmatpush3.xpose.msk.msra.mxu1 %vm113_vm0, %v279_v22 }
 0x13c   :  { %794 = vmatprep.subr.mxu1 %v998_v16 }
 0x13e   :  { %792 = vmatmul.mubr.msk.f32.vlgmr.msra.gmra.mrb[2].mxu1 %vm113_vm0, %v187_v24 }
 0x13f   :  { %795 = vmatpush3.xpose.msk.msra.mxu1 %vm113_vm0, %v284_v25  ;;  %796 = vmatprep.mubr.msk.f32.mxu1 %vm999_vm1, %v998_v16 }
 0x140   :  { %804 = vmatprep.subr.mxu1 %v998_v16 }
 0x141   :  { %v788_v49 = vpop.f32.mrb[2].mxu0 }
 0x142   :  { %797 = vmatmul.mubr.msk.f32.vlgmr.msra.gmra.mrb[4].mxu1 %vm113_vm0, %v192_v26  ;;  %v364_v51 = vpop.f32.mrb[3].mxu0  ;;  %v370_v53 = vadd.f32 %v788_v49, %v721_v50 }
 0x143   :  { %806 = vmatprep.mubr.msk.f32.mxu1 %vm999_vm1, %v998_v16  ;;  %v365_v52 = vadd.f32 %v721_v50, %v364_v51 }
 0x144   :  { %805 = vmatpush3.msra.mxu1 %v370_v53 }
 0x145   :  { %800 = vmatpush3.msra.mxu0 %v365_v52 }
 0x211   :  { %v445_v33 = vpop.f32.mrb[2].mxu1 }
 0x212   :  { %v793_v34 = vpop.f32.mrb[3].mxu1  ;;  %v526_v35 = vsel %vm525_vm2, %v445_v33, -inf }
 0x213   :  { %527 = vmax.xlane.f32.xlu0 %v526_v35 }
 0x215   :  { %v521_v36 = vpop.f32.mrb[4].mxu1 }
 0x216   :  { %v798_v37 = vpop.f32.mrb[5].mxu1  ;;  %v529_v38 = vsel %vm525_vm2, %v521_v36, -inf }
 0x217   :  { %530 = vmax.xlane.f32.xlu0 %v529_v38 }
 0x2a0   :  { %v528_v39 = vpop.xlane.xlu0 %527 }
 0x2a1   :  { %v532_v40 = vsub.f32 %v445_v33, %v528_v39 }
 0x2a3   :  { %v534_v41 = vmul.f32 1.442695, %v532_v40 }
 0x2a4   :  { %v531_v42 = vpop.xlane.xlu0 %530 }
 0x2a5   :  { %843 = vpow2.f32 %v534_v41  ;;  %v533_v43 = vsub.f32 %v521_v36, %v531_v42 }
 0x2a7   :  { %v536_v44 = vmul.f32 1.442695, %v533_v43 }
 0x2a9   :  { %845 = vpow2.f32 %v536_v44 }
 0x2af   :  { %v844_v45 = vpop.eup %843 }
 0x2b0   :  { %v538_v46 = vsel %vm525_vm2, %v844_v45, 0.0 }
 0x2b1   :  { %539 = vadd.xlane.f32.xlu1 %v538_v46 }
 0x2b3   :  { %v846_v47 = vpop.eup %845 }
 0x2b4   :  { %v541_v48 = vsel %vm525_vm2, %v846_v47, 0.0 }
 0x2b5   :  { %542 = vadd.xlane.f32.xlu1 %v541_v48 }
 0x33e   :  { %v540_v54 = vpop.xlane.xlu1 %539 }
 0x33f   :  { %847 = vrcp.f32 %v540_v54 }
 0x342   :  { %v543_v55 = vpop.xlane.xlu1 %542 }
 0x343   :  { %849 = vrcp.f32 %v543_v55 }
 0x349   :  { %v848_v56 = vpop.eup %847 }
 0x34a   :  { %v546_v57 = vmul.f32 %v848_v56, %v844_v45 }
 0x34c   :  { %802 = vmatmul.mubr.msk.f32.vlgmr.msra.gmra.mrb[4].mxu0 %vm525_vm2, %v546_v57 }
 0x34d   :  { %v850_v58 = vpop.eup %849 }
 0x34e   :  { %v547_v59 = vmul.f32 %v850_v58, %v846_v47 }
 0x350   :  { %807 = vmatmul.mubr.msk.f32.vlgmr.msra.gmra.mrb[6].mxu1 %vm525_vm2, %v547_v59 }
 0x41f   :  { %v617_v60 = vpop.f32.mrb[4].mxu0 }
 0x420   :  { %694 = vst.msk [vmem:[#allocation11] sm:$0xff] %vm113_vm0, %v617_v60  ;;  %v803_v61 = vpop.f32.mrb[5].mxu0 }
 0x423   :  { %v690_v62 = vpop.f32.mrb[6].mxu1 }
 0x424   :  { %695 = vst.msk [vmem:[#allocation11 + $0x8] sm:$0xff] %vm113_vm0, %v690_v62  ;;  %v808_v63 = vpop.f32.mrb[7].mxu1 }
 0x425   :  { %972 = shalt.err (!%p969_p2)
}
 0x426   :  { %s973_s29 = scalar_lea.hbm %s1189_s8, 256 }
 0x427   :  { %p974_p3 = scmp.ne.s32.totalorder %s1189_s8, %s973_s29  ;;  %p977_p4 = scmp.lt.u32.totalorder %s973_s29, %s1189_s8 }
 0x429   :  { %p979_p5 = pnand %p977_p4, %p974_p3 }
 0x42b   :  { %982 = shalt.err (!%p979_p5)
}
 0x42c   :  { %707 = dma.vmem_to_hbm [thread:$0]  %s702_s7, 256, %s1189_s8, [#allocation4], %s993_s17, %s993_s17, %s994_s18  }
 0x42d   :  { %989 = dma.done.wait [#allocation4], 256  }
 0x42e   :  { %990 = vsyncadd [#allocation4], 4294967040 }
 0x42f   :  { %711 = vsyncpa [#allocation3], 1 }
 0x430   :  { %712 = vsyncpa [#allocation6], 1 }
 0x431   :  { %713 = vsyncpa [#allocation9], 1 }
 0x432   :  { %714 = vsyncpa [#allocation4], 1 }

</bundles_post_ra>
